<compile_context>
chip_gen: v7x
topology: tpu7x:2x2x1
jax: 0.10.0
libtpu: 0.0.40
codegen_flags: <defaults>
</compile_context>

<pallas_src>
from functools import partial

import numpy as np
import jax
import jax.numpy as jnp
from jax import lax
from jax.experimental import pallas as pl
from jax.experimental.pallas import tpu as pltpu


def _ncc_kernel(scale_ref, sup_ref, onehot_t_ref, q_ref, tmask_ref,
                logits_ref, loss_ref):
    """One grid step processes a block of E_b episodes.

    sup_ref      [E_b, S, D]      support embeddings (f32 or bf16)
    onehot_t_ref [E_b, n_way, S]  f32 one-hot support labels, 1/count folded in
    q_ref        [E_b, Q, D]      query embeddings (f32 or bf16)
    tmask_ref    [E_b, Q, n_way]  f32 one-hot query labels
    logits_ref   [E_b, Q, n_way]  f32 output
    loss_ref     [E_b, 1, 1]      f32 output (per-episode mean NLL)
    """
    sup = sup_ref[...].astype(jnp.float32)
    q = q_ref[...].astype(jnp.float32)
    onehot_t = onehot_t_ref[...]
    tmask = tmask_ref[...]
    scale = scale_ref[0, 0]

    # --- prototypes: per-class mean, batched over episodes (NN matmul) ---
    # TODO(synk): reference uses poincare_mean with curvature args['test.c'];
    # the Euclidean mean (c -> 0 limit) is implemented here.
    prots = jnp.einsum('ens,esd->end', onehot_t, sup,
                       preferred_element_type=jnp.float32)       # [E_b,n_way,D]

    # --- cosine similarity * scale (NT matmul + rsqrt norms) ---
    dots = jnp.einsum('eqd,end->eqn', q, prots,
                      preferred_element_type=jnp.float32)        # [E_b,Q,n_way]
    # reference clamps |q||p| at 1e-30; clamping each squared norm at 1e-36 is
    # equivalent except for exactly-degenerate (near-zero) embeddings
    tiny = jnp.float32(1e-36)
    inv_qn = lax.rsqrt(jnp.maximum(jnp.sum(q * q, axis=-1, keepdims=True),
                                   tiny))                        # [E_b,Q,1]
    inv_pn = lax.rsqrt(jnp.maximum(jnp.sum(prots * prots, axis=-1),
                                   tiny))[:, None, :]            # [E_b,1,n_way]
    logits = dots * (inv_qn * scale) * inv_pn
    logits_ref[...] = logits

    # --- cross-entropy loss (log_softmax + nll); single store per block ---
    z = logits - jnp.max(logits, axis=-1, keepdims=True)
    logp = z - jnp.log(jnp.sum(jnp.exp(z), axis=-1, keepdims=True))
    nll = -jnp.sum(logp * tmask, axis=-1, keepdims=True)         # [E_b,Q,1]
    loss_ref[...] = jnp.mean(nll, axis=1, keepdims=True)         # [E_b,1,1]


def _choose_block(E, per_episode_bytes):
    """Episodes per grid step. ~4 MiB of inputs per block keeps the 2x
    double-buffered pipeline well under v5e's 16 MiB scoped-VMEM default and
    v7x's 64 MiB physical VMEM."""
    budget = 4 * 1024 * 1024
    cap = max(1, budget // max(per_episode_bytes, 1))
    if E >= 2:
        # keep grid length >= 2 so ("parallel",) can feed both v7x TCs
        cap = min(cap, pl.cdiv(E, 2))
    return min(E, cap)


def _build_pallas_fn(E_pad, E_b, S, Q, D, n_way, emb_dtype):
    grid = (E_pad // E_b,)
    itemsize = jnp.dtype(emb_dtype).itemsize
    in_bytes = E_pad * ((S + Q) * D * itemsize + (n_way * S + Q * n_way) * 4) + 4
    out_bytes = E_pad * (Q * n_way + 1) * 4
    cost = pl.CostEstimate(
        flops=2 * E_pad * n_way * D * (S + Q),
        transcendentals=E_pad * (Q * n_way + 2 * Q + n_way),
        bytes_accessed=in_bytes + out_bytes)
    smem = pltpu.MemorySpace.SMEM
    in_specs = [
        pl.BlockSpec(memory_space=smem),                          # scale (1,1)
        pl.BlockSpec((E_b, S, D), lambda g: (g, 0, 0)),           # support
        pl.BlockSpec((E_b, n_way, S), lambda g: (g, 0, 0)),       # onehot^T/counts
        pl.BlockSpec((E_b, Q, D), lambda g: (g, 0, 0)),           # query
        pl.BlockSpec((E_b, Q, n_way), lambda g: (g, 0, 0)),       # target mask
    ]
    out_specs = (
        pl.BlockSpec((E_b, Q, n_way), lambda g: (g, 0, 0)),       # logits
        pl.BlockSpec((E_b, 1, 1), lambda g: (g, 0, 0)),           # per-episode loss
    )
    out_shape = (
        jax.ShapeDtypeStruct((E_pad, Q, n_way), jnp.float32),
        jax.ShapeDtypeStruct((E_pad, 1, 1), jnp.float32),
    )
    return pl.pallas_call(
        _ncc_kernel,
        grid=grid,
        in_specs=in_specs,
        out_specs=out_specs,
        out_shape=out_shape,
        cost_estimate=cost,
        compiler_params=pltpu.CompilerParams(
            dimension_semantics=("parallel",)),
    )


@partial(jax.jit, static_argnames=("n_way",))
def _ncc_forward_batched(support, support_labels, query, query_labels, scale,
                         *, n_way):
    """Stacked episodes: support [E,S,D], support_labels [E,S], query [E,Q,D],
    query_labels [E,Q].  Returns (logits [E,Q,n_way] f32, preds [E,Q] i32,
    stats [E,2] f32 = [loss, acc])."""
    support = jnp.asarray(support)
    query = jnp.asarray(query)
    E, S, D = support.shape
    Q = query.shape[1]
    sup_lab = jnp.asarray(support_labels, jnp.int32)
    q_lab = jnp.asarray(query_labels, jnp.int32)

    # lane-pad D to a multiple of 128 (zeros change neither dots nor norms)
    Dp = 128 * pl.cdiv(D, 128)
    if Dp != D:
        support = jnp.pad(support, ((0, 0), (0, 0), (0, Dp - D)))
        query = jnp.pad(query, ((0, 0), (0, 0), (0, Dp - D)))
    # NOTE: S/Q blocks cover the full array dims so the (8,128) rule is met;
    # production shapes should already keep S,Q as multiples of 8.

    # precompute (cheap XLA) the count-normalized one-hot and the target mask
    # so integer labels never reach VMEM
    cls = jnp.arange(n_way, dtype=jnp.int32)
    onehot_t = (sup_lab[:, None, :] == cls[None, :, None]).astype(jnp.float32)
    counts = jnp.sum(onehot_t, axis=-1, keepdims=True)
    onehot_t = onehot_t / jnp.maximum(counts, 1.0)                  # [E,n_way,S]
    tmask = (q_lab[:, :, None] == cls[None, None, :]).astype(jnp.float32)

    itemsize = jnp.dtype(support.dtype).itemsize
    per_ep_bytes = ((S + Q) * Dp * itemsize
                    + (n_way * S + 2 * Q * n_way + 1) * 4)
    E_b = _choose_block(E, per_ep_bytes)
    E_pad = E_b * pl.cdiv(E, E_b)
    if E_pad != E:
        pad = ((0, E_pad - E), (0, 0), (0, 0))
        support = jnp.pad(support, pad)
        query = jnp.pad(query, pad)
        onehot_t = jnp.pad(onehot_t, pad)
        tmask = jnp.pad(tmask, pad)

    scale_arr = jnp.asarray(scale, jnp.float32).reshape(1, 1)
    fn = _build_pallas_fn(E_pad, E_b, S, Q, Dp, n_way, support.dtype)
    logits, loss = fn(scale_arr, support, onehot_t, query, tmask)
    logits = logits[:E]
    loss = loss[:E, 0, 0]

    preds = jnp.argmax(logits, axis=-1).astype(jnp.int32)           # [E,Q]
    acc = jnp.mean((preds == q_lab).astype(jnp.float32), axis=-1)   # [E]
    stats = jnp.stack([loss, acc], axis=-1)                         # [E,2]
    return logits, preds, stats


def adaptive_cosine_ncc_batched(support_embeddings, support_labels,
                                query_embeddings, query_labels,
                                scale=10.0, *, n_way):
    """Fast path for many episodes stacked along a leading axis."""
    return _ncc_forward_batched(support_embeddings, support_labels,
                                query_embeddings, query_labels,
                                jnp.float32(scale), n_way=n_way)


def adaptive_cosine_ncc(support_embeddings, support_labels,
                        query_embeddings, query_labels,
                        scale=10.0, n_way=None, return_logits=False):
    """Single-episode API matching AdaptiveCosineNCC.forward."""
    if n_way is None:
        # TODO(synk): prefer passing n_way statically; deriving it here forces
        # a host round-trip (matches len(query_labels.unique()) in the spec).
        n_way = int(np.unique(np.asarray(query_labels)).size)
    logits, preds, stats = _ncc_forward_batched(
        jnp.asarray(support_embeddings)[None],
        jnp.asarray(support_labels, jnp.int32)[None],
        jnp.asarray(query_embeddings)[None],
        jnp.asarray(query_labels, jnp.int32)[None],
        jnp.float32(scale), n_way=n_way)
    if return_logits:
        return logits[0]
    loss = stats[0, 0]
    acc = stats[0, 1]
    # Device arrays returned (caller may .item() if it wants the host sync the
    # torch reference performs).
    stats_dict = {'loss': loss, 'acc': acc}
    pred_dict = {'preds': preds[0],
                 'labels': jnp.asarray(query_labels, jnp.int32)}
    return loss, stats_dict, pred_dict


def _reference(sup, sup_lab, q, q_lab, scale, n_way):
    sup = np.asarray(sup, np.float64)
    q = np.asarray(q, np.float64)
    sup_lab = np.asarray(sup_lab)
    q_lab = np.asarray(q_lab)
    prots = np.stack([sup[sup_lab == i].mean(0) for i in range(n_way)])
    num = q @ prots.T
    den = np.maximum(np.linalg.norm(q, axis=1, keepdims=True) *
                     np.linalg.norm(prots, axis=1, keepdims=True).T, 1e-30)
    logits = num / den * scale
    z = logits - logits.max(1, keepdims=True)
    logp = z - np.log(np.exp(z).sum(1, keepdims=True))
    preds = logp.argmax(1)
    loss = -logp[np.arange(q_lab.shape[0]), q_lab].mean()
    acc = (preds == q_lab).mean()
    return logits, loss, acc, preds


if __name__ == "__main__":
    key = jax.random.PRNGKey(0)
    n_way, n_shot, n_query_per_class, D = 4, 5, 4, 32
    S = n_way * n_shot             # 20 support samples / episode
    Q = n_way * n_query_per_class  # 16 query samples / episode
    E = 6                          # episodes (-> E_b=3, grid=(2,))

    ks, kq = jax.random.split(key)
    sup_b = jax.random.normal(ks, (E, S, D), jnp.float32)
    q_b = jax.random.normal(kq, (E, Q, D), jnp.float32)
    sup_lab = jnp.asarray(np.tile(np.arange(n_way), n_shot), jnp.int32)
    q_lab = jnp.asarray(np.tile(np.arange(n_way), n_query_per_class), jnp.int32)
    sup_lab_b = jnp.broadcast_to(sup_lab, (E, S))
    q_lab_b = jnp.broadcast_to(q_lab, (E, Q))

    # --- single-episode API (return_logits=True and full loss path) ---
    logits0 = adaptive_cosine_ncc(sup_b[0], sup_lab, q_b[0], q_lab,
                                  n_way=n_way, return_logits=True)
    loss0, stats0, pred0 = adaptive_cosine_ncc(sup_b[0], sup_lab, q_b[0], q_lab,
                                               n_way=n_way)
    jax.block_until_ready((logits0, loss0))

    rl, rloss, racc, rp = _reference(sup_b[0], sup_lab, q_b[0], q_lab, 10.0, n_way)
    np.testing.assert_allclose(np.asarray(logits0), rl, rtol=1e-4, atol=1e-4)
    np.testing.assert_allclose(float(loss0), rloss, rtol=1e-4, atol=1e-4)
    np.testing.assert_allclose(float(stats0['acc']), racc, rtol=1e-5, atol=1e-5)
    np.testing.assert_array_equal(np.asarray(pred0['preds']), rp)

    # --- batched API: 6 episodes, 3 per grid step, parallel grid of 2 ---
    logits_b, preds_b, stats_b = adaptive_cosine_ncc_batched(
        sup_b, sup_lab_b, q_b, q_lab_b, n_way=n_way)
    logits_b = jax.block_until_ready(logits_b)
    for e in range(E):
        rl, rloss, racc, rp = _reference(sup_b[e], sup_lab, q_b[e], q_lab,
                                         10.0, n_way)
        np.testing.assert_allclose(np.asarray(logits_b[e]), rl,
                                   rtol=1e-4, atol=1e-4)
        np.testing.assert_allclose(float(stats_b[e, 0]), rloss,
                                   rtol=1e-4, atol=1e-4)
        np.testing.assert_allclose(float(stats_b[e, 1]), racc,
                                   rtol=1e-5, atol=1e-5)
        np.testing.assert_array_equal(np.asarray(preds_b[e]), rp)

    # --- bf16 embeddings pass straight through (half the embedding DMA) ---
    logits_bf16 = adaptive_cosine_ncc(sup_b[0].astype(jnp.bfloat16), sup_lab,
                                      q_b[0].astype(jnp.bfloat16), q_lab,
                                      n_way=n_way, return_logits=True)
    logits_bf16 = jax.block_until_ready(logits_bf16)
    np.testing.assert_allclose(np.asarray(logits_bf16, dtype=np.float32),
                               np.asarray(logits0), rtol=0.05, atol=0.3)

    print("KERNEL_OK")
</pallas_src>

<mosaic_0001>
module attributes {stable_mosaic.version = 11 : i64} {
  func.func @_ncc_kernel(%arg0: i32, %arg1: memref<1x1xf32, #tpu.memory_space<smem>>, %arg2: memref<1x20x128xf32, #tpu.memory_space<vmem>>, %arg3: memref<1x4x20xf32, #tpu.memory_space<vmem>>, %arg4: memref<1x16x128xf32, #tpu.memory_space<vmem>>, %arg5: memref<1x16x4xf32, #tpu.memory_space<vmem>>, %arg6: memref<1x16x4xf32, #tpu.memory_space<vmem>>, %arg7: memref<1x1x1xf32, #tpu.memory_space<vmem>>) attributes {dimension_semantics = [#tpu.dimension_semantics<parallel>], iteration_bounds = array<i64: 1>, scalar_prefetch = 0 : i64, scratch_operands = 0 : i64, tpu.core_type = #tpu.core_type<tc>, window_params = [{transform_indices = @transform_0, window_bounds = array<i64: 1, 1>}, {transform_indices = @transform_1, window_bounds = array<i64: 1, 20, 128>}, {transform_indices = @transform_2, window_bounds = array<i64: 1, 4, 20>}, {transform_indices = @transform_3, window_bounds = array<i64: 1, 16, 128>}, {transform_indices = @transform_4, window_bounds = array<i64: 1, 16, 4>}, {transform_indices = @transform_5, window_bounds = array<i64: 1, 16, 4>}, {transform_indices = @transform_6, window_bounds = array<i64: 1, 1, 1>}]} {
    %c0 = arith.constant 0 : index
    %c0_0 = arith.constant 0 : index
    %c0_1 = arith.constant 0 : index
    %0 = vector.load %arg2[%c0, %c0_0, %c0_1] : memref<1x20x128xf32, #tpu.memory_space<vmem>>, vector<1x20x128xf32>
    %c0_2 = arith.constant 0 : index
    %c0_3 = arith.constant 0 : index
    %c0_4 = arith.constant 0 : index
    %1 = vector.load %arg4[%c0_2, %c0_3, %c0_4] : memref<1x16x128xf32, #tpu.memory_space<vmem>>, vector<1x16x128xf32>
    %c0_5 = arith.constant 0 : index
    %c0_6 = arith.constant 0 : index
    %c0_7 = arith.constant 0 : index
    %2 = vector.load %arg3[%c0_5, %c0_6, %c0_7] : memref<1x4x20xf32, #tpu.memory_space<vmem>>, vector<1x4x20xf32>
    %c0_8 = arith.constant 0 : index
    %c0_9 = arith.constant 0 : index
    %c0_10 = arith.constant 0 : index
    %3 = vector.load %arg5[%c0_8, %c0_9, %c0_10] : memref<1x16x4xf32, #tpu.memory_space<vmem>>, vector<1x16x4xf32>
    %c0_11 = arith.constant 0 : index
    %c0_12 = arith.constant 0 : index
    %4 = memref.load %arg1[%c0_11, %c0_12] : memref<1x1xf32, #tpu.memory_space<smem>>
    "tpu.trace_start"() <{level = 10 : i32, message = "ens,esd->end"}> : () -> ()
    %cst = arith.constant dense<0.000000e+00> : vector<1x4x128xf32>
    %5 = tpu.matmul %2, %0, %cst {dimension_numbers = #tpu.dot_dimension_numbers<[2], [1], [1], [2], [0, 0, 0, 1, 1, 2], [0], [0]>} : vector<1x4x20xf32>, vector<1x20x128xf32>, vector<1x4x128xf32> -> vector<1x4x128xf32>
    "tpu.trace_stop"() : () -> ()
    "tpu.trace_start"() <{level = 10 : i32, message = "eqd,end->eqn"}> : () -> ()
    %cst_13 = arith.constant dense<0.000000e+00> : vector<1x16x4xf32>
    %6 = tpu.matmul %1, %5, %cst_13 {dimension_numbers = #tpu.dot_dimension_numbers<[2], [2], [1], [1], [0, 0, 0, 1, 1, 1], [0], [0]>} : vector<1x16x128xf32>, vector<1x4x128xf32>, vector<1x16x4xf32> -> vector<1x16x4xf32>
    "tpu.trace_stop"() : () -> ()
    %7 = arith.mulf %1, %1 : vector<1x16x128xf32>
    %cst_14 = arith.constant dense<0.000000e+00> : vector<1x16xf32>
    %8 = vector.multi_reduction <add>, %7, %cst_14 [2] : vector<1x16x128xf32> to vector<1x16xf32>
    %9 = vector.shape_cast %8 : vector<1x16xf32> to vector<1x16x1xf32>
    %cst_15 = arith.constant 1.000000e-36 : f32
    %10 = vector.broadcast %cst_15 : f32 to vector<1x16x1xf32>
    %11 = arith.maximumf %9, %10 : vector<1x16x1xf32>
    %12 = math.rsqrt %11 : vector<1x16x1xf32>
    %13 = arith.mulf %5, %5 : vector<1x4x128xf32>
    %cst_16 = arith.constant dense<0.000000e+00> : vector<1x4xf32>
    %14 = vector.multi_reduction <add>, %13, %cst_16 [2] : vector<1x4x128xf32> to vector<1x4xf32>
    %cst_17 = arith.constant 1.000000e-36 : f32
    %15 = vector.broadcast %cst_17 : f32 to vector<1x4xf32>
    %16 = arith.maximumf %14, %15 : vector<1x4xf32>
    %17 = math.rsqrt %16 : vector<1x4xf32>
    %18 = vector.shape_cast %17 : vector<1x4xf32> to vector<1x1x4xf32>
    %19 = vector.broadcast %4 : f32 to vector<1x16x1xf32>
    %20 = arith.mulf %12, %19 : vector<1x16x1xf32>
    %21 = vector.broadcast %20 : vector<1x16x1xf32> to vector<1x16x4xf32>
    %22 = arith.mulf %6, %21 : vector<1x16x4xf32>
    %23 = vector.broadcast %18 : vector<1x1x4xf32> to vector<1x16x4xf32>
    %24 = arith.mulf %22, %23 : vector<1x16x4xf32>
    %c0_18 = arith.constant 0 : index
    %c0_19 = arith.constant 0 : index
    %c0_20 = arith.constant 0 : index
    %25 = vector.load %arg6[%c0_18, %c0_19, %c0_20] : memref<1x16x4xf32, #tpu.memory_space<vmem>>, vector<1x16x4xf32>
    tpu.vector_store %arg6[%c0_18, %c0_19, %c0_20], %24 {strides = array<i32>} : memref<1x16x4xf32, #tpu.memory_space<vmem>>, vector<1x16x4xf32>,
    %cst_21 = arith.constant dense<0xFF800000> : vector<1x16xf32>
    %26 = vector.multi_reduction <maximumf>, %24, %cst_21 [2] : vector<1x16x4xf32> to vector<1x16xf32>
    %27 = vector.shape_cast %26 : vector<1x16xf32> to vector<1x16x1xf32>
    %28 = vector.broadcast %27 : vector<1x16x1xf32> to vector<1x16x4xf32>
    %29 = arith.subf %24, %28 : vector<1x16x4xf32>
    %30 = math.exp %29 : vector<1x16x4xf32>
    %cst_22 = arith.constant dense<0.000000e+00> : vector<1x16xf32>
    %31 = vector.multi_reduction <add>, %30, %cst_22 [2] : vector<1x16x4xf32> to vector<1x16xf32>
    %32 = vector.shape_cast %31 : vector<1x16xf32> to vector<1x16x1xf32>
    %33 = math.log %32 : vector<1x16x1xf32>
    %34 = vector.broadcast %33 : vector<1x16x1xf32> to vector<1x16x4xf32>
    %35 = arith.subf %29, %34 : vector<1x16x4xf32>
    %36 = arith.mulf %35, %3 : vector<1x16x4xf32>
    %cst_23 = arith.constant dense<0.000000e+00> : vector<1x16xf32>
    %37 = vector.multi_reduction <add>, %36, %cst_23 [2] : vector<1x16x4xf32> to vector<1x16xf32>
    %38 = vector.shape_cast %37 : vector<1x16xf32> to vector<1x16x1xf32>
    %cst_24 = arith.constant 0.000000e+00 : f32
    %39 = vector.broadcast %cst_24 : f32 to vector<1x16x1xf32>
    %40 = arith.subf %39, %38 : vector<1x16x1xf32>
    %cst_25 = arith.constant dense<0.000000e+00> : vector<1x1xf32>
    %41 = vector.multi_reduction <add>, %40, %cst_25 [1] : vector<1x16x1xf32> to vector<1x1xf32>
    %42 = vector.shape_cast %41 : vector<1x1xf32> to vector<1x1x1xf32>
    %cst_26 = arith.constant 1.600000e+01 : f32
    %43 = vector.broadcast %cst_26 : f32 to vector<1x1x1xf32>
    %44 = arith.divf %42, %43 : vector<1x1x1xf32>
    %c0_27 = arith.constant 0 : index
    %c0_28 = arith.constant 0 : index
    %c0_29 = arith.constant 0 : index
    %45 = vector.load %arg7[%c0_27, %c0_28, %c0_29] : memref<1x1x1xf32, #tpu.memory_space<vmem>>, vector<1x1x1xf32>
    tpu.vector_store %arg7[%c0_27, %c0_28, %c0_29], %44 {strides = array<i32>} : memref<1x1x1xf32, #tpu.memory_space<vmem>>, vector<1x1x1xf32>,
    return
  }
  func.func @transform_0(%arg0: i32) -> (i32, i32) {
    %c0_i32 = arith.constant 0 : i32
    %c0_i32_0 = arith.constant 0 : i32
    %c0_i32_1 = arith.constant 0 : i32
    return %c0_i32, %c0_i32_0 : i32, i32
  }
  func.func @transform_1(%arg0: i32) -> (i32, i32, i32) {
    %c0_i32 = arith.constant 0 : i32
    %c0_i32_0 = arith.constant 0 : i32
    %c0_i32_1 = arith.constant 0 : i32
    return %arg0, %c0_i32, %c0_i32_0 : i32, i32, i32
  }
  func.func @transform_2(%arg0: i32) -> (i32, i32, i32) {
    %c0_i32 = arith.constant 0 : i32
    %c0_i32_0 = arith.constant 0 : i32
    %c0_i32_1 = arith.constant 0 : i32
    return %arg0, %c0_i32, %c0_i32_0 : i32, i32, i32
  }
  func.func @transform_3(%arg0: i32) -> (i32, i32, i32) {
    %c0_i32 = arith.constant 0 : i32
    %c0_i32_0 = arith.constant 0 : i32
    %c0_i32_1 = arith.constant 0 : i32
    return %arg0, %c0_i32, %c0_i32_0 : i32, i32, i32
  }
  func.func @transform_4(%arg0: i32) -> (i32, i32, i32) {
    %c0_i32 = arith.constant 0 : i32
    %c0_i32_0 = arith.constant 0 : i32
    %c0_i32_1 = arith.constant 0 : i32
    return %arg0, %c0_i32, %c0_i32_0 : i32, i32, i32
  }
  func.func @transform_5(%arg0: i32) -> (i32, i32, i32) {
    %c0_i32 = arith.constant 0 : i32
    %c0_i32_0 = arith.constant 0 : i32
    %c0_i32_1 = arith.constant 0 : i32
    return %arg0, %c0_i32, %c0_i32_0 : i32, i32, i32
  }
  func.func @transform_6(%arg0: i32) -> (i32, i32, i32) {
    %c0_i32 = arith.constant 0 : i32
    %c0_i32_0 = arith.constant 0 : i32
    %c0_i32_1 = arith.constant 0 : i32
    return %arg0, %c0_i32, %c0_i32_0 : i32, i32, i32
  }
}

</mosaic_0001>

<bundles_post_ra>
// kernel: _ncc_forward_batched.1
= control target key start
LH: loop header
LB: loop body
LE: loop exit
PB: predicated region body
PF: predicated region fallthrough
CT: control target
= control target key end

     0   :  { %v363_v2 = vmov 0.0|0.0   ;;  %vm364_vm0 = vmmov 0   ;;  %v365_v4 = vmov 0.0   ;;  %s457_s0 = inlined_call_operand.<no memory space> [shape: f32[1,1], index: 0, kind: input, shape index: {}]   ;;  %s458_s1 = inlined_call_operand.vmem [shape: f32[1,20,128], index: 1, kind: input, shape index: {}]   ;;  %s459_s2 = inlined_call_operand.vmem [shape: f32[1,4,20], index: 2, kind: input, shape index: {}]   ;;  %s460_s3 = inlined_call_operand.vmem [shape: f32[1,16,128], index: 3, kind: input, shape index: {}]   ;;  %s461_s4 = inlined_call_operand.vmem [shape: f32[1,16,4], index: 4, kind: input, shape index: {}]   ;;  %s462_s5 = inlined_call_operand.vmem [shape: f32[1,16,4], index: 5, kind: output, shape index: {0}]   ;;  %s463_s6 = inlined_call_operand.hbm [shape: f32[1,1,1], index: 6, kind: output, shape index: {1}]  }
   0x1   :  { %v24_v0 = vld [vmem:[%s458_s1] sm:$0xff]  ;;  %v25_v1 = vld [vmem:[%s458_s1 + $0x8] sm:$0xff]  ;;  %318 = vmatprep.subr.bf16.mxu0 %v363_v2  ;;  %310 = vmatprep.mubr.msk.f32.mxu0 %vm364_vm0, %v365_v4 }
   0x2   :  { %v319_v3 = vpack.c.bf16 %v25_v1, %v24_v0 }
   0x3   :  { %13 = vsyncpa [#allocation4], 0  ;;  %v26_v5 = vld [vmem:[%s458_s1 + $0x10] sm:$0xf]  ;;  %vm37_vm1 = vcmask 1043456   ;;  %vm33_vm2 = vcmask 162816   ;;  %v208_v21 = vlaneseq  ;;  %v202_v25 = vstv %s457_s0 }
   0x4   :  { %320 = vmatpush3.bf16.msra.mxu0 %v319_v3  ;;  %v29_v6 = vld [vmem:[%s459_s2] sm:$0xf]  ;;  %v28_v9 = vld [vmem:[%s460_s3 + $0x8] sm:$0xff]  ;;  %vm229_vm3 = vcmask 31744   ;;  %vm275_vm4 = vcmask 0  }
   0x5   :  { %308 = vmatprep.subr.mxu0 %v365_v4  ;;  %v27_v7 = vld [vmem:[%s460_s3] sm:$0xff]  ;;  %v187_v10 = vmul.f32 %v28_v9, %v28_v9  ;;  %v209_v22 = vand.u32 127, %v208_v21  ;;  %v211_v23 = vshrl.u32 %v208_v21, 7  ;;  %v31_v56 = vld [vmem:[%s461_s4 + $0x8] sm:$0xff] }
   0x6   :  { %315 = vmatprep.mubr.f32.mxu1 %v27_v7  ;;  %v186_v8 = vmul.f32 %v27_v7, %v27_v7  ;;  %v30_v58 = vld [vmem:[%s461_s4] sm:$0xff]  ;;  %s366_s4 = smov [#allocation3]  }
   0x7   :  { %v212_v28 = vsub.s32 %v209_v22, %v211_v23  ;;  %s285_s14 = sshll.u32 %s366_s4, 4  ;;  %s286_s14 = int_to_ptr.vmem [resolvable:$true] %s285_s14 }
   0x8   :  { %309 = vmatpush3.msk.msra.mxu0 %vm37_vm1, %v26_v5  ;;  %188 = vadd.xlane.f32.xlu0 %v186_v8  ;;  %s339_s15 = scalar_lea.vmem %s286_s14, 16  ;;  %s343_s16 = scalar_lea.vmem %s286_s14, 32 }
   0x9   :  { %311 = vmatmul.mubr.msk.f32.vlgmr.msra.gmra.mrb[0].mxu0 %vm33_vm2, %v29_v6  ;;  %p340_p0 = scmp.ne.s32.totalorder %s286_s14, %s339_s15  ;;  %p344_p1 = scmp.lt.s32.totalorder %s286_s14, %s286_s14 }
   0xa   :  { %p345_p2 = scmp.lt.s32.totalorder %s343_s16, %s339_s15 }
   0xc   :  { %190 = vadd.xlane.f32.xlu0 %v187_v10  ;;  %p346_p3 = por %p345_p2, %p344_p1 }
   0xe   :  { %p347_p4 = pnand %p346_p3, %p340_p0 }
  0x95   :  { %v189_v15 = vpop.xlane.xlu0 %188 }
  0x96   :  { %v192_v19 = vmax.f32 %v189_v15, 1e-36 }
  0x99   :  { %v191_v16 = vpop.xlane.xlu0 %190 }
  0x9a   :  { %v193_v17 = vmax.f32 %v191_v16, 1e-36 }
  0x9c   :  { %325 = vrsqrt.f32 %v193_v17 }
  0x9d   :  { %327 = vrsqrt.f32 %v192_v19 }
  0xa6   :  { %v326_v24 = vpop.eup %325 }
  0xa7   :  { %v328_v26 = vpop.eup %327  ;;  %v204_v27 = vmul.f32 %v326_v24, %v202_v25 }
  0xa8   :  { %v203_v31 = vmul.f32 %v328_v26, %v202_v25 }
  0xdc   :  { %v107_v11 = vpop.f32.mrb[0].mxu0 }
  0xdd   :  { %v312_v12 = vpop.f32.mrb[1].mxu0  ;;  %313 = vmatprep.subr.mxu1 %v107_v11  ;;  %v196_v13 = vmul.f32 %v107_v11, %v107_v11 }
  0xde   :  { %314 = vmatpush3.xpose.msra.mxu1 %v107_v11 }
  0xdf   :  { %v197_v14 = vsel %vm37_vm1, %v196_v13, 0.0 }
  0xe0   :  { %198 = vadd.xlane.f32.xlu1 %v197_v14 }
  0xe1   :  { %316 = vmatmul.mubr.f32.vlgmr.msra.gmra.mrb[0].mxu1 %v28_v9 }
 0x16d   :  { %v199_v18 = vpop.xlane.xlu1 %198 }
 0x16e   :  { %v200_v20 = vmax.f32 %v199_v18, 1e-36 }
 0x170   :  { %329 = vrsqrt.f32 %v200_v20 }
 0x17a   :  { %v330_v29 = vpop.eup %329 }
 0x17b   :  { %v213_v33 = vrot.slane %v330_v29, %v212_v28 }
 0x1b4   :  { %v317_v30 = vpop.f32.mrb[0].mxu1 }
 0x1b5   :  { %v206_v32 = vmul.f32 %v317_v30, %v204_v27  ;;  %v177_v34 = vpop.f32.mrb[1].mxu1 }
 0x1b6   :  { %v205_v35 = vmul.f32 %v203_v31, %v177_v34 }
 0x1b7   :  { %v228_v36 = vmul.f32 %v213_v33, %v206_v32 }
 0x1b8   :  { %v227_v37 = vmul.f32 %v213_v33, %v205_v35 }
 0x1b9   :  { %231 = vst.msk [vmem:[%s462_s5 + $0x8] sm:$0xff] %vm229_vm3, %v228_v36  ;;  %v235_v38 = vsel %vm229_vm3, %v228_v36, -inf }
 0x1ba   :  { %230 = vst.msk [vmem:[%s462_s5] sm:$0xff] %vm229_vm3, %v227_v37  ;;  %236 = vmax.xlane.f32.xlu0 %v235_v38  ;;  %v232_v39 = vsel %vm229_vm3, %v227_v37, -inf }
 0x1bb   :  { %233 = vmax.xlane.f32.xlu1 %v232_v39 }
 0x247   :  { %v237_v40 = vpop.xlane.xlu0 %236 }
 0x248   :  { %v239_v41 = vsub.f32 %v228_v36, %v237_v40  ;;  %v234_v42 = vpop.xlane.xlu1 %233 }
 0x249   :  { %v238_v43 = vsub.f32 %v227_v37, %v234_v42 }
 0x24a   :  { %v242_v44 = vmul.f32 1.442695, %v239_v41 }
 0x24b   :  { %v240_v45 = vmul.f32 1.442695, %v238_v43 }
 0x24c   :  { %331 = vpow2.f32 %v242_v44 }
 0x24d   :  { %333 = vpow2.f32 %v240_v45 }
 0x256   :  { %v332_v46 = vpop.eup %331 }
 0x257   :  { %v334_v47 = vpop.eup %333  ;;  %v247_v48 = vsel %vm229_vm3, %v332_v46, 0.0 }
 0x258   :  { %248 = vadd.xlane.f32.xlu0 %v247_v48  ;;  %v244_v49 = vsel %vm229_vm3, %v334_v47, 0.0 }
 0x259   :  { %245 = vadd.xlane.f32.xlu1 %v244_v49 }
 0x2e5   :  { %v249_v50 = vpop.xlane.xlu0 %248 }
 0x2e6   :  { %335 = vlog2.f32 %v249_v50  ;;  %v246_v51 = vpop.xlane.xlu1 %245 }
 0x2e7   :  { %337 = vlog2.f32 %v246_v51 }
 0x2f0   :  { %v336_v52 = vpop.eup %335 }
 0x2f1   :  { %v338_v53 = vpop.eup %337  ;;  %v253_v54 = vmul.f32 0.6931472, %v336_v52 }
 0x2f2   :  { %v251_v55 = vmul.f32 0.6931472, %v338_v53 }
 0x2f3   :  { %v255_v57 = vsub.f32 %v239_v41, %v253_v54 }
 0x2f4   :  { %v254_v59 = vsub.f32 %v238_v43, %v251_v55 }
 0x2f5   :  { %v257_v60 = vmul.f32 %v255_v57, %v31_v56 }
 0x2f6   :  { %v256_v61 = vmul.f32 %v254_v59, %v30_v58 }
 0x2f7   :  { %v261_v62 = vsel %vm229_vm3, %v257_v60, 0.0 }
 0x2f8   :  { %262 = vadd.xlane.f32.xlu0 %v261_v62  ;;  %v258_v63 = vsel %vm229_vm3, %v256_v61, 0.0 }
 0x2f9   :  { %259 = vadd.xlane.f32.xlu1 %v258_v63 }
 0x385   :  { %v263_v0 = vpop.xlane.xlu0 %262 }
 0x386   :  { %v265_v1 = vsub.f32 0.0, %v263_v0  ;;  %v260_v2 = vpop.xlane.xlu1 %259 }
 0x387   :  { %v264_v3 = vsub.f32 0.0, %v260_v2 }
 0x389   :  { %v266_v4 = vadd.f32 %v265_v1, %v264_v3 }
 0x38b   :  { %v267_v5 = vrot.slane %v266_v4, 4 }
 0x38d   :  { %v268_v6 = vadd.f32 %v267_v5, %v266_v4 }
 0x38f   :  { %v269_v7 = vrot.slane %v268_v6, 2 }
 0x391   :  { %v270_v8 = vadd.f32 %v269_v7, %v268_v6 }
 0x393   :  { %v271_v9 = vrot.slane %v270_v8, 1 }
 0x395   :  { %v272_v10 = vadd.f32 %v271_v9, %v270_v8 }
 0x397   :  { %v274_v11 = vmul.f32 0.0625, %v272_v10 }
 0x399   :  { %276 = vst.msk [vmem:[#allocation3] sm:$0x1] %vm275_vm4, %v274_v11 }
 0x39a   :  { %350 = shalt.err (!%p347_p4)
}
 0x39b   :  { %s351_s19 = scalar_lea.hbm %s463_s6, 16 }
 0x39c   :  { %p352_p5 = scmp.ne.s32.totalorder %s463_s6, %s351_s19  ;;  %p355_p6 = scmp.lt.u32.totalorder %s351_s19, %s463_s6 }
 0x39e   :  { %p357_p7 = pnand %p355_p6, %p352_p5 }
 0x3a0   :  { %360 = shalt.err (!%p357_p7)
}
 0x3a1   :  { %288 = dma.vmem_to_hbm [thread:$0]  %s286_s14, 16, %s463_s6, [#allocation4]  }
 0x3a2   :  { %361 = dma.done.wait [#allocation4], 16  }
 0x3a3   :  { %362 = vsyncadd [#allocation4], 4294967280 }
 0x3a4   :  { %294 = vsyncpa [#allocation4], 1 }

</bundles_post_ra>
